<compile_context>
chip_gen: v7x
topology: tpu7x:2x2x1
jax: 0.10.0
libtpu: 0.0.40
codegen_flags: <defaults>
</compile_context>

<pallas_src>
import jax
import jax.numpy as jnp
from jax.experimental import pallas as pl
from jax.experimental.pallas import tpu as pltpu


N_HEADS = 3                      # three prop heads
HEAD_OUT = 6                     # output_size (asserted == 6 in the PyTorch module)
N_OUT = N_HEADS * HEAD_OUT       # 18
HIDDEN_PAD = 128                 # hidden_size (40) zero-padded to one full lane tile


def mlp_discrete_kernel(scalars_ref,                      # SMEM (2,): [1/||prop||, 1/temp]
                        iu_ref, prop_ref,                 # (tb, iu_size), (tb, prop_size)
                        wh_iu_ref, wh_prop_ref, bh_ref,   # trunk weights (hidden padded)
                        wph_t_ref, bph_t_ref,             # fused head W^T (18,128), b^T (18,1)
                        out_ref):                         # (18, tb) lane-dense probabilities
    inv_norm = scalars_ref[0]
    inv_temp = scalars_ref[1]

    iu = iu_ref[...]
    prop = prop_ref[...] * inv_norm       # x = x / ||x|| applied to the encoder output

    # Trunk: h = relu(concat([iu, prop_norm]) @ Wh + bh) as two K-split partial matmuls,
    # so no in-kernel lane concat of the two input streams is needed.
    # TODO(synk): if the producing pipeline can emit one fused (B, 9) or feature-major
    #             (9, B) input, collapse these into a single dot and one DMA stream.
    h = jnp.dot(iu, wh_iu_ref[...], preferred_element_type=jnp.float32)
    h = h + jnp.dot(prop, wh_prop_ref[...], preferred_element_type=jnp.float32)
    h = jnp.maximum(h + bh_ref[...], 0.0)                 # (tb, 128)

    # All three prop heads in a single MXU pass, producing logits already TRANSPOSED
    # (heads on sublanes, batch on lanes) so the output store is lane-dense:
    #   logits_t[o, b] = sum_k w_heads_t[o, k] * h[b, k]
    logits_t = jax.lax.dot_general(
        wph_t_ref[...], h,
        dimension_numbers=(((1,), (1,)), ((), ())),
        preferred_element_type=jnp.float32)               # (18, tb)
    logits_t = (logits_t + bph_t_ref[...]) * inv_temp

    # Per-head numerically stable softmax over the 6 head rows (sublane axis).
    probs = []
    for hd in range(N_HEADS):
        t = logits_t[hd * HEAD_OUT:(hd + 1) * HEAD_OUT, :]
        t = t - jnp.max(t, axis=0, keepdims=True)
        e = jnp.exp(t)
        probs.append(e / jnp.sum(e, axis=0, keepdims=True))
    out_ref[...] = jnp.concatenate(probs, axis=0)         # one lane-dense store per tile


def _round_up(x, m):
    return ((x + m - 1) // m) * m


def _pick_batch_tile(batch, block_b):
    """Tile must be a multiple of 128 (lane-dense out block) and give >= 2 grid steps when
    possible, so the 'parallel' batch axis shards over v7x's two TensorCores."""
    if batch <= 128:
        return batch              # single tile; block dim == full array dim is allowed
    return max(128, min(block_b, _round_up(pl.cdiv(batch, 2), 128)))


def mlp_model_discrete_forward(inputs, params, *, block_b=2048, head_major_output=False):
    """inputs: {'item_and_utility': (B, iu_size), 'prop': (B, prop_size)}.
    params: output of prepare_params().
    Returns (output, term_probs, utte_probs, prop_probs); prop_probs is a list of three
    (B, 6) arrays (or head-major (6, B) arrays when head_major_output=True, which skips
    the wrapper-side relayout)."""
    iu = inputs["item_and_utility"].astype(jnp.float32)
    prop = inputs["prop"].astype(jnp.float32)
    B, iu_size = iu.shape
    prop_size = prop.shape[1]

    # The global L2 norm spans every batch row, so it is reduced outside the batch-tiled
    # kernel and passed in as a scalar (together with 1/temp).
    # TODO(synk): this is a second full read of `prop`; fuse the sum-of-squares into the
    #             producer of `prop` (or a feature-major pre-reduction) when available.
    inv_norm = 1.0 / jnp.sqrt(jnp.sum(prop * prop))
    inv_temp = 1.0 / params["temp"].reshape(())
    scalars = jnp.stack([inv_norm, inv_temp]).astype(jnp.float32)

    tb = _pick_batch_tile(B, block_b)
    grid = (pl.cdiv(B, tb),)

    fused_t = pl.pallas_call(
        mlp_discrete_kernel,
        grid=grid,
        in_specs=[
            pl.BlockSpec(memory_space=pltpu.MemorySpace.SMEM),        # scalars
            pl.BlockSpec((tb, iu_size), lambda i: (i, 0)),            # item_and_utility
            pl.BlockSpec((tb, prop_size), lambda i: (i, 0)),          # prop
            pl.BlockSpec((iu_size, HIDDEN_PAD), lambda i: (0, 0)),    # Wh (iu rows)
            pl.BlockSpec((prop_size, HIDDEN_PAD), lambda i: (0, 0)),  # Wh (prop rows)
            pl.BlockSpec((1, HIDDEN_PAD), lambda i: (0, 0)),          # bh
            pl.BlockSpec((N_OUT, HIDDEN_PAD), lambda i: (0, 0)),      # fused head weights^T
            pl.BlockSpec((N_OUT, 1), lambda i: (0, 0)),               # fused head biases^T
        ],
        out_specs=pl.BlockSpec((N_OUT, tb), lambda i: (0, i)),        # lane-dense output
        out_shape=jax.ShapeDtypeStruct((N_OUT, B), jnp.float32),
        compiler_params=pltpu.CompilerParams(
            dimension_semantics=("parallel",),
            vmem_limit_bytes=32 * 1024 * 1024),
    )(scalars, iu, prop,
      params["wh_iu"], params["wh_prop"], params["bh"],
      params["w_heads_t"], params["b_heads_t"])

    heads = [fused_t[hd * HEAD_OUT:(hd + 1) * HEAD_OUT, :] for hd in range(N_HEADS)]
    if not head_major_output:
        # Match the PyTorch module's (B, 6) per-head layout.  If the downstream consumer
        # accepts head-major (6, B) arrays, pass head_major_output=True and skip this.
        heads = [h.T for h in heads]
    output = None       # gru encoder output (encoder is None)
    term_probs = None
    utte_probs = None
    return output, term_probs, utte_probs, heads


def init_raw_params(key, in_size, hidden_size=40, output_size=HEAD_OUT):
    """Deterministic init mimicking nn.Linear defaults (uniform(-1/sqrt(fan_in), +))."""
    def linear(k, fan_in, fan_out):
        kw, kb = jax.random.split(k)
        bound = 1.0 / (fan_in ** 0.5)
        w = jax.random.uniform(kw, (fan_in, fan_out), jnp.float32, -bound, bound)
        b = jax.random.uniform(kb, (1, fan_out), jnp.float32, -bound, bound)
        return w, b

    ks = jax.random.split(key, 1 + N_HEADS)
    wh, bh = linear(ks[0], in_size, hidden_size)
    heads = [linear(ks[1 + i], hidden_size, output_size) for i in range(N_HEADS)]
    return dict(
        wh=wh, bh=bh,
        w_prop=[h[0] for h in heads], b_prop=[h[1] for h in heads],
        temp=jnp.ones((1,), jnp.float32),
    )


def prepare_params(raw, iu_size):
    """Pad hidden 40->128, split the first layer along K, fuse + transpose the 3 heads."""
    in_size, hidden = raw["wh"].shape
    wh_pad = jnp.zeros((in_size, HIDDEN_PAD), jnp.float32).at[:, :hidden].set(raw["wh"])
    bh_pad = jnp.zeros((1, HIDDEN_PAD), jnp.float32).at[:, :hidden].set(raw["bh"])
    w_heads = jnp.concatenate(raw["w_prop"], axis=1)                  # (hidden, 18)
    w_heads_t = (jnp.zeros((N_OUT, HIDDEN_PAD), jnp.float32)
                 .at[:, :hidden].set(w_heads.T))                      # (18, 128)
    b_heads_t = jnp.concatenate(raw["b_prop"], axis=1).T              # (18, 1)
    return dict(
        wh_iu=wh_pad[:iu_size],
        wh_prop=wh_pad[iu_size:],
        bh=bh_pad,
        w_heads_t=w_heads_t,
        b_heads_t=b_heads_t,
        temp=raw["temp"],
    )


def ref_forward(iu, prop, raw):
    """Pure-JAX reference matching the PyTorch forward (encoder = identity)."""
    x = prop / jnp.linalg.norm(prop)
    x = jnp.concatenate([iu, x], axis=-1)
    h = jnp.maximum(x @ raw["wh"] + raw["bh"], 0.0)
    temp = raw["temp"][0]
    return [jax.nn.softmax((h @ w + b) / temp, axis=-1)
            for w, b in zip(raw["w_prop"], raw["b_prop"])]


if __name__ == "__main__":
    key = jax.random.PRNGKey(0)
    k_iu, k_prop, k_p = jax.random.split(key, 3)

    B, iu_size, prop_size, hidden_size = 256, 6, 3, 40
    iu = jax.random.normal(k_iu, (B, iu_size), jnp.float32)
    prop = jax.random.normal(k_prop, (B, prop_size), jnp.float32)

    raw = init_raw_params(k_p, iu_size + prop_size, hidden_size, HEAD_OUT)
    params = prepare_params(raw, iu_size)

    # Default block_b -> tb=128, grid=(2,): exercises the multi-tile / parallel grid path.
    out, term_probs, utte_probs, prop_probs = mlp_model_discrete_forward(
        {"item_and_utility": iu, "prop": prop}, params)
    prop_probs = jax.block_until_ready(prop_probs)

    ref = ref_forward(iu, prop, raw)
    assert out is None and term_probs is None and utte_probs is None
    for got, want in zip(prop_probs, ref):
        assert got.shape == want.shape
        assert jnp.allclose(got, want, atol=1e-5, rtol=1e-5), "mismatch vs reference"
        assert jnp.allclose(jnp.sum(got, axis=-1), 1.0, atol=1e-5), "rows do not sum to 1"

    print("KERNEL_OK")
</pallas_src>

<mosaic_0001>
module attributes {stable_mosaic.version = 11 : i64} {
  func.func @mlp_discrete_kernel(%arg0: i32, %arg1: memref<2xf32, #tpu.memory_space<smem>>, %arg2: memref<128x6xf32, #tpu.memory_space<vmem>>, %arg3: memref<128x3xf32, #tpu.memory_space<vmem>>, %arg4: memref<6x128xf32, #tpu.memory_space<vmem>>, %arg5: memref<3x128xf32, #tpu.memory_space<vmem>>, %arg6: memref<1x128xf32, #tpu.memory_space<vmem>>, %arg7: memref<18x128xf32, #tpu.memory_space<vmem>>, %arg8: memref<18x1xf32, #tpu.memory_space<vmem>>, %arg9: memref<18x128xf32, #tpu.memory_space<vmem>>) attributes {dimension_semantics = [#tpu.dimension_semantics<parallel>], iteration_bounds = array<i64: 2>, scalar_prefetch = 0 : i64, scratch_operands = 0 : i64, tpu.core_type = #tpu.core_type<tc>, window_params = [{transform_indices = @transform_0, window_bounds = array<i64: 2>}, {transform_indices = @transform_1, window_bounds = array<i64: 128, 6>}, {transform_indices = @transform_2, window_bounds = array<i64: 128, 3>}, {pipeline_mode = #tpu.pipeline_mode<synchronous>, transform_indices = @transform_3, window_bounds = array<i64: 6, 128>}, {pipeline_mode = #tpu.pipeline_mode<synchronous>, transform_indices = @transform_4, window_bounds = array<i64: 3, 128>}, {pipeline_mode = #tpu.pipeline_mode<synchronous>, transform_indices = @transform_5, window_bounds = array<i64: 1, 128>}, {pipeline_mode = #tpu.pipeline_mode<synchronous>, transform_indices = @transform_6, window_bounds = array<i64: 18, 128>}, {pipeline_mode = #tpu.pipeline_mode<synchronous>, transform_indices = @transform_7, window_bounds = array<i64: 18, 1>}, {transform_indices = @transform_8, window_bounds = array<i64: 18, 128>}]} {
    %c0 = arith.constant 0 : index
    %0 = memref.load %arg1[%c0] : memref<2xf32, #tpu.memory_space<smem>>
    %c1 = arith.constant 1 : index
    %1 = memref.load %arg1[%c1] : memref<2xf32, #tpu.memory_space<smem>>
    %c0_0 = arith.constant 0 : index
    %c0_1 = arith.constant 0 : index
    %2 = vector.load %arg2[%c0_0, %c0_1] : memref<128x6xf32, #tpu.memory_space<vmem>>, vector<128x6xf32>
    %c0_2 = arith.constant 0 : index
    %c0_3 = arith.constant 0 : index
    %3 = vector.load %arg3[%c0_2, %c0_3] : memref<128x3xf32, #tpu.memory_space<vmem>>, vector<128x3xf32>
    %4 = vector.broadcast %0 : f32 to vector<128x3xf32>
    %5 = arith.mulf %3, %4 : vector<128x3xf32>
    %c0_4 = arith.constant 0 : index
    %c0_5 = arith.constant 0 : index
    %6 = vector.load %arg4[%c0_4, %c0_5] : memref<6x128xf32, #tpu.memory_space<vmem>>, vector<6x128xf32>
    %cst = arith.constant dense<0.000000e+00> : vector<128x128xf32>
    %7 = tpu.matmul %2, %6, %cst {dimension_numbers = #tpu.dot_dimension_numbers<[1], [0], [0], [1], [0, 0, 1, 1], [], []>} : vector<128x6xf32>, vector<6x128xf32>, vector<128x128xf32> -> vector<128x128xf32>
    %c0_6 = arith.constant 0 : index
    %c0_7 = arith.constant 0 : index
    %8 = vector.load %arg5[%c0_6, %c0_7] : memref<3x128xf32, #tpu.memory_space<vmem>>, vector<3x128xf32>
    %cst_8 = arith.constant dense<0.000000e+00> : vector<128x128xf32>
    %9 = tpu.matmul %5, %8, %cst_8 {dimension_numbers = #tpu.dot_dimension_numbers<[1], [0], [0], [1], [0, 0, 1, 1], [], []>} : vector<128x3xf32>, vector<3x128xf32>, vector<128x128xf32> -> vector<128x128xf32>
    %10 = arith.addf %7, %9 : vector<128x128xf32>
    %c0_9 = arith.constant 0 : index
    %c0_10 = arith.constant 0 : index
    %11 = vector.load %arg6[%c0_9, %c0_10] : memref<1x128xf32, #tpu.memory_space<vmem>>, vector<1x128xf32>
    %12 = vector.broadcast %11 : vector<1x128xf32> to vector<128x128xf32>
    %13 = arith.addf %10, %12 : vector<128x128xf32>
    %cst_11 = arith.constant 0.000000e+00 : f32
    %14 = vector.broadcast %cst_11 : f32 to vector<128x128xf32>
    %15 = arith.maximumf %13, %14 : vector<128x128xf32>
    %c0_12 = arith.constant 0 : index
    %c0_13 = arith.constant 0 : index
    %16 = vector.load %arg7[%c0_12, %c0_13] : memref<18x128xf32, #tpu.memory_space<vmem>>, vector<18x128xf32>
    %cst_14 = arith.constant dense<0.000000e+00> : vector<18x128xf32>
    %17 = tpu.matmul %16, %15, %cst_14 {dimension_numbers = #tpu.dot_dimension_numbers<[1], [1], [0], [0], [0, 0, 1, 0], [], []>} : vector<18x128xf32>, vector<128x128xf32>, vector<18x128xf32> -> vector<18x128xf32>
    %c0_15 = arith.constant 0 : index
    %c0_16 = arith.constant 0 : index
    %18 = vector.load %arg8[%c0_15, %c0_16] : memref<18x1xf32, #tpu.memory_space<vmem>>, vector<18x1xf32>
    %19 = vector.broadcast %18 : vector<18x1xf32> to vector<18x128xf32>
    %20 = arith.addf %17, %19 : vector<18x128xf32>
    %21 = vector.broadcast %1 : f32 to vector<18x128xf32>
    %22 = arith.mulf %20, %21 : vector<18x128xf32>
    %23 = vector.extract_strided_slice %22 {offsets = [0, 0], sizes = [6, 128], strides = [1, 1]} : vector<18x128xf32> to vector<6x128xf32>
    %cst_17 = arith.constant dense<0xFF800000> : vector<128xf32>
    %24 = vector.multi_reduction <maximumf>, %23, %cst_17 [0] : vector<6x128xf32> to vector<128xf32>
    %25 = vector.shape_cast %24 : vector<128xf32> to vector<1x128xf32>
    %26 = vector.broadcast %25 : vector<1x128xf32> to vector<6x128xf32>
    %27 = arith.subf %23, %26 : vector<6x128xf32>
    %28 = math.exp %27 : vector<6x128xf32>
    %cst_18 = arith.constant dense<0.000000e+00> : vector<128xf32>
    %29 = vector.multi_reduction <add>, %28, %cst_18 [0] : vector<6x128xf32> to vector<128xf32>
    %30 = vector.shape_cast %29 : vector<128xf32> to vector<1x128xf32>
    %31 = vector.broadcast %30 : vector<1x128xf32> to vector<6x128xf32>
    %32 = arith.divf %28, %31 : vector<6x128xf32>
    %33 = vector.extract_strided_slice %22 {offsets = [6, 0], sizes = [6, 128], strides = [1, 1]} : vector<18x128xf32> to vector<6x128xf32>
    %cst_19 = arith.constant dense<0xFF800000> : vector<128xf32>
    %34 = vector.multi_reduction <maximumf>, %33, %cst_19 [0] : vector<6x128xf32> to vector<128xf32>
    %35 = vector.shape_cast %34 : vector<128xf32> to vector<1x128xf32>
    %36 = vector.broadcast %35 : vector<1x128xf32> to vector<6x128xf32>
    %37 = arith.subf %33, %36 : vector<6x128xf32>
    %38 = math.exp %37 : vector<6x128xf32>
    %cst_20 = arith.constant dense<0.000000e+00> : vector<128xf32>
    %39 = vector.multi_reduction <add>, %38, %cst_20 [0] : vector<6x128xf32> to vector<128xf32>
    %40 = vector.shape_cast %39 : vector<128xf32> to vector<1x128xf32>
    %41 = vector.broadcast %40 : vector<1x128xf32> to vector<6x128xf32>
    %42 = arith.divf %38, %41 : vector<6x128xf32>
    %43 = vector.extract_strided_slice %22 {offsets = [12, 0], sizes = [6, 128], strides = [1, 1]} : vector<18x128xf32> to vector<6x128xf32>
    %cst_21 = arith.constant dense<0xFF800000> : vector<128xf32>
    %44 = vector.multi_reduction <maximumf>, %43, %cst_21 [0] : vector<6x128xf32> to vector<128xf32>
    %45 = vector.shape_cast %44 : vector<128xf32> to vector<1x128xf32>
    %46 = vector.broadcast %45 : vector<1x128xf32> to vector<6x128xf32>
    %47 = arith.subf %43, %46 : vector<6x128xf32>
    %48 = math.exp %47 : vector<6x128xf32>
    %cst_22 = arith.constant dense<0.000000e+00> : vector<128xf32>
    %49 = vector.multi_reduction <add>, %48, %cst_22 [0] : vector<6x128xf32> to vector<128xf32>
    %50 = vector.shape_cast %49 : vector<128xf32> to vector<1x128xf32>
    %51 = vector.broadcast %50 : vector<1x128xf32> to vector<6x128xf32>
    %52 = arith.divf %48, %51 : vector<6x128xf32>
    %53 = tpu.concatenate %32, %42, %52 in 0 : vector<6x128xf32>, vector<6x128xf32>, vector<6x128xf32> -> vector<18x128xf32>
    %c0_23 = arith.constant 0 : index
    %c0_24 = arith.constant 0 : index
    %54 = vector.load %arg9[%c0_23, %c0_24] : memref<18x128xf32, #tpu.memory_space<vmem>>, vector<18x128xf32>
    tpu.vector_store %arg9[%c0_23, %c0_24], %53 {strides = array<i32>} : memref<18x128xf32, #tpu.memory_space<vmem>>, vector<18x128xf32>,
    return
  }
  func.func @transform_0(%arg0: i32) -> i32 {
    %c0_i32 = arith.constant 0 : i32
    %c0_i32_0 = arith.constant 0 : i32
    return %c0_i32 : i32
  }
  func.func @transform_1(%arg0: i32) -> (i32, i32) {
    %c0_i32 = arith.constant 0 : i32
    %c0_i32_0 = arith.constant 0 : i32
    return %arg0, %c0_i32 : i32, i32
  }
  func.func @transform_2(%arg0: i32) -> (i32, i32) {
    %c0_i32 = arith.constant 0 : i32
    %c0_i32_0 = arith.constant 0 : i32
    return %arg0, %c0_i32 : i32, i32
  }
  func.func @transform_3(%arg0: i32) -> (i32, i32) {
    %c0_i32 = arith.constant 0 : i32
    %c0_i32_0 = arith.constant 0 : i32
    %c0_i32_1 = arith.constant 0 : i32
    return %c0_i32, %c0_i32_0 : i32, i32
  }
  func.func @transform_4(%arg0: i32) -> (i32, i32) {
    %c0_i32 = arith.constant 0 : i32
    %c0_i32_0 = arith.constant 0 : i32
    %c0_i32_1 = arith.constant 0 : i32
    return %c0_i32, %c0_i32_0 : i32, i32
  }
  func.func @transform_5(%arg0: i32) -> (i32, i32) {
    %c0_i32 = arith.constant 0 : i32
    %c0_i32_0 = arith.constant 0 : i32
    %c0_i32_1 = arith.constant 0 : i32
    return %c0_i32, %c0_i32_0 : i32, i32
  }
  func.func @transform_6(%arg0: i32) -> (i32, i32) {
    %c0_i32 = arith.constant 0 : i32
    %c0_i32_0 = arith.constant 0 : i32
    %c0_i32_1 = arith.constant 0 : i32
    return %c0_i32, %c0_i32_0 : i32, i32
  }
  func.func @transform_7(%arg0: i32) -> (i32, i32) {
    %c0_i32 = arith.constant 0 : i32
    %c0_i32_0 = arith.constant 0 : i32
    %c0_i32_1 = arith.constant 0 : i32
    return %c0_i32, %c0_i32_0 : i32, i32
  }
  func.func @transform_8(%arg0: i32) -> (i32, i32) {
    %c0_i32 = arith.constant 0 : i32
    %c0_i32_0 = arith.constant 0 : i32
    return %c0_i32, %arg0 : i32, i32
  }
}

</mosaic_0001>

<bundles_post_ra>
// kernel: tpu_custom_call.1
= control target key start
LH: loop header
LB: loop body
LE: loop exit
PB: predicated region body
PF: predicated region fallthrough
CT: control target
= control target key end

     0   :  { %13 = vsyncpa [#allocation4], 0  ;;  %s1823_s0 = inlined_call_operand.vmem [shape: f32[2], index: 0, kind: input, shape index: {}]   ;;  %s1824_s1 = inlined_call_operand.vmem [shape: f32[256,6], index: 1, kind: input, shape index: {}]   ;;  %s1825_s2 = inlined_call_operand.vmem [shape: f32[256,3], index: 2, kind: input, shape index: {}]   ;;  %s1826_s3 = inlined_call_operand.vmem [shape: f32[6,128], index: 3, kind: input, shape index: {}]   ;;  %s1827_s4 = inlined_call_operand.vmem [shape: f32[3,128], index: 4, kind: input, shape index: {}]   ;;  %s1828_s5 = inlined_call_operand.vmem [shape: f32[1,128], index: 5, kind: input, shape index: {}]   ;;  %s1829_s6 = inlined_call_operand.vmem [shape: f32[18,128], index: 6, kind: input, shape index: {}]   ;;  %s1830_s7 = inlined_call_operand.vmem [shape: f32[18,1], index: 7, kind: input, shape index: {}]   ;;  %s1831_s8 = inlined_call_operand.hbm [shape: f32[18,256], index: 8, kind: output, shape index: {}]  }
   0x1   :  { %14 = vsyncpa [#allocation3], 0 }
   0x2   :  { %16 = vsyncpa [#allocation3 + $0x1], 0  ;;  %s1572_s27 = smov 0   ;;  %s1574_s28 = smov 0  }
   0x3   :  { %s1576_s29 = smov 0   ;;  %s1578_s30 = smov 0  }
   0x4 LB: > { %s1593_s9 = sadd.s32 4294967295, %s1516_s30   ;;  %s1124_s10 = sadd.s32 4294967294, %s1516_s30   ;;  %s1516_s30 = sphi %s1578_s30, %s1838_s30   ;;  %s1512_s29 = sphi %s1576_s29, %s1837_s29   ;;  %s1508_s28 = sphi %s1574_s28, %s1836_s28   ;;  %s1504_s27 = sphi %s1572_s27, %s1835_s27  }
   0x5   : > { %s1597_s11 = sadd.s32 1, %s1516_s30   ;;  %s207_s12 = sadd.s32 1, %s1512_s29 }
   0x6   : > { %s204_s13 = ssub.s32 %s1516_s30, %s1597_s11  ;;  %p217_p0 = scmp.ne.s32.totalorder %s1512_s29, %s1508_s28 }
   0x7   : > { %p205_p1 = scmp.eq.s32.totalorder %s204_s13, 0  ;;  %p218_p2 = scmp.eq.s32.totalorder %s1593_s9, 1 }
   0x8   : > { %p223_p3 = scmp.ne.s32.totalorder %s1508_s28, %s1504_s27  ;;  %p224_p4 = scmp.eq.s32.totalorder %s1124_s10, 1 }
   0x9   : > { %s1608_s14 = scalar_select %p205_p1, %s1512_s29, %s207_s12  }
   0xa   : > { %p1610_p5 = por %p218_p2, %p217_p0  ;;  %p1614_p6 = por %p224_p4, %p223_p3 }
   0xb   : > { %p1125_p7 = scmp.ge.s32.totalorder %s1516_s30, 1  ;;  %p231_p8 = scmp.lt.s32.totalorder %s1516_s30, 3 }
   0xc   : > { %p1374_p9 = scmp.eq.s32.totalorder %s1593_s9, 0  ;;  %s244_s20 = sshll.u32 %s1823_s0, 4  ;;  %s245_s20 = int_to_ptr.vmem [resolvable:$true] %s244_s20 }
   0xd   : > { %p1621_p10 = pnand %p1125_p7, %p231_p8  ;;  %s1435_s21 = scalar_lea.vmem %s245_s20, 16 }
   0xe   : > { %p1436_p13 = scmp.ne.s32.totalorder %s245_s20, %s1435_s21  ;;  %p1443_p3 = scmp.lt.s32.totalorder %s245_s20, %s245_s20 }
   0xf   : > { %p1366_p11 = pneg %p1621_p10  ;;  %p1444_p4 = scmp.lt.s32.totalorder %s1435_s21, %s1435_s21 }
  0x11   : > { %p1367_p12 = pnand %p1374_p9, %p1366_p11  ;;  %p1445_p7 = por %p1444_p4, %p1443_p3 }
  0x13   : > { %p1437_p0 = pneg %p1367_p12 }
  0x15   : > { %p1438_p1 = pnand %p1437_p0, %p1436_p13 }
  0x17   : > { %p1439_p2 = pneg %p1438_p1 }
  0x19   : > { %p1446_p8 = pnand %p1445_p7, %p1439_p2 }
  0x1b   : > { %1449 = shalt.err (!%p1446_p8)
}
  0x1c   : > { %s1518_s22 = smov [#allocation2]   ;;  %290 = sbr.rel (%p1621_p10) target bundleno = 663 (0x297), region = 52 }
  0x1d   : > { %1369 = dma.vmem_to_smem (!%p1367_p12), %s245_s20, 16, %s1518_s22, [#allocation4]  }
  0x23   : > { %1495 = dma.done.wait (%p1374_p9), [#allocation4], 16  }
  0x24   : > { %1497 = vsyncadd (%p1374_p9), [#allocation4], 4294967280 }
  0x25   : > { %296 = sfence }
  0x26   : > { %v394_v0 = vld [vmem:[%s1827_s4] sm:$0x7]  ;;  %vm444_vm0 = vcmask 1042432   ;;  %s1130_s25 = sshll.u32 %s1593_s9, 4  ;;  %s342_s26 = sld [smem:[#allocation2]]  ;;  %vm642_vm1 = vcmask 1045504  }
  0x27   : > { %1226 = vmatprep.subr.msk.mxu0 %vm444_vm0, %v394_v0  ;;  %p331_p11 = scmp.lt.s32.totalorder %s1130_s25, 31  ;;  %v393_v1 = vld [vmem:[%s1826_s3] sm:$0x3f]  ;;  %vm395_vm2 = vcmask 23552   ;;  %vm593_vm3 = vcmask 48128   ;;  %v1519_v51 = vmov 0.0|0.0  }
  0x28   : > { %1227 = vmatpush3.msk.msra.mxu0 %vm444_vm0, %v394_v0  ;;  %1319 = vmatprep.subr.bf16.mxu1 %v1519_v51  ;;  %vm1520_vm4 = vmmov 0   ;;  %v1521_v52 = vmov 0.0   ;;  %v833_v53 = vld [vmem:[%s1830_s7] sm:$0xff]  ;;  %v835_v54 = vld [vmem:[%s1830_s7 + $0x10] sm:$0x3]  ;;  %v1522_v55 = vmov 0  }
  0x29   : > { %s1840_s25 = smov (!%p331_p11, %s1130_s25), 31  ;;  %1252 = vmatprep.subr.msk.mxu0 %vm642_vm1, %v393_v1  ;;  %1310 = vmatprep.mubr.msk.f32.mxu1 %vm1520_vm4, %v1521_v52  ;;  %v834_v56 = vld [vmem:[%s1830_s7 + $0x8] sm:$0xff]  ;;  %v1169_v57 = vld [vmem:[%s1828_s5] ss:$0 sm:$0xff]  ;;  %s1134_s24 = sld [smem:[#allocation2 + $0x1]]  ;;  %vm954_vm5 = vcmask 1047558  }
  0x2a   : > { %s1131_s13 = sshll.u32 %s1840_s25, 3  ;;  %1417 = vset.pattern.permute.xlu0 %v1522_v55  ;;  %1418 = vset.pattern.permute.xlu1 %v1522_v55  ;;  %vm956_vm6 = vcmask 1043456   ;;  %vm973_vm7 = vcmask 1041408   ;;  %vm988_vm8 = vcmask 1047556   ;;  %s327_s25 = sand.u32 1, %s1508_s28  }
  0x2b   : > { %s1654_s19 = scalar_lea.vmem %s1825_s2, %s1131_s13  ;;  %s1691_s22 = scalar_lea.vmem %s1824_s1, %s1131_s13  ;;  %838 = vperm.xlu0 %1417, %v833_v53   ;;  %848 = vperm.xlu1 %1418, %v835_v54   ;;  %v831_v53 = vld [vmem:[%s1829_s6 + $0x8] sm:$0xff] }
  0x2c   : > { %v376_v2 = vstv %s342_s26  ;;  %v360_v3 = vld [vmem:[%s1654_s19] sm:$0xff]  ;;  %v361_v4 = vld [vmem:[%s1654_s19 + $0x8] sm:$0xff]  ;;  %v362_v5 = vld [vmem:[%s1654_s19 + $0x10] sm:$0xff]  ;;  %s1359_s26 = smul.u32 24, %s327_s25  ;;  %s1170_s10 = sshll.u32 %s1593_s9, 7 }
  0x2d   : > { %v377_v6 = vmul.f32 %v376_v2, %v360_v3  ;;  %v378_v7 = vmul.f32 %v376_v2, %v361_v4  ;;  %v379_v8 = vmul.f32 %v376_v2, %v362_v5  ;;  %v363_v9 = vld [vmem:[%s1654_s19 + $0x18] sm:$0xff]  ;;  %v364_v10 = vld [vmem:[%s1654_s19 + $0x20] sm:$0xff]  ;;  %v365_v13 = vld [vmem:[%s1654_s19 + $0x28] sm:$0xff]  ;;  %s1782_s9 = scalar_lea.sflag [#allocation3], %s327_s25  ;;  %s1523_s21 = smov [#allocation5]  }
  0x2e   : > { %v380_v11 = vmul.f32 %v376_v2, %v363_v9  ;;  %v381_v12 = vmul.f32 %v376_v2, %v364_v10  ;;  %v366_v14 = vld [vmem:[%s1654_s19 + $0x30] sm:$0xff]  ;;  %v382_v15 = vmul.f32 %v376_v2, %v365_v13  ;;  %v367_v17 = vld [vmem:[%s1654_s19 + $0x38] sm:$0xff]  ;;  %v368_v18 = vld [vmem:[%s1654_s19 + $0x40] sm:$0xff]  ;;  %s329_s12 = scalar_lea.vmem [#allocation5], %s1359_s26 }
  0x2f   : > { %1228 = vmatprep.mubr.msk.f32.mxu0 %vm395_vm2, %v377_v6  ;;  %v383_v16 = vmul.f32 %v376_v2, %v366_v14  ;;  %v384_v19 = vmul.f32 %v376_v2, %v367_v17  ;;  %v385_v20 = vmul.f32 %v376_v2, %v368_v18  ;;  %v369_v21 = vld [vmem:[%s1654_s19 + $0x48] sm:$0xff]  ;;  %v370_v22 = vld [vmem:[%s1654_s19 + $0x50] sm:$0xff]  ;;  %v371_v25 = vld [vmem:[%s1654_s19 + $0x58] sm:$0xff]  ;;  %843 = vperm.xlu0 %1417, %v834_v56   ;;  %v931_v56 = vstv %s1134_s24  ;;  %s1038_s13 = sshll.u32 %s329_s12, 4  ;;  %s1779_s13 = int_to_ptr.vmem [resolvable:$true] %s1038_s13 }
  0x30   : > { %1229 = vmatmul.mubr.msk.f32.vlgmr.msra.gmra.mrb[0].mxu0 %vm395_vm2, %v378_v7  ;;  %v386_v23 = vmul.f32 %v376_v2, %v369_v21  ;;  %v387_v24 = vmul.f32 %v376_v2, %v370_v22  ;;  %v372_v26 = vld [vmem:[%s1654_s19 + $0x60] sm:$0xff]  ;;  %v388_v27 = vmul.f32 %v376_v2, %v371_v25  ;;  %v373_v29 = vld [vmem:[%s1654_s19 + $0x68] sm:$0xff]  ;;  %v374_v30 = vld [vmem:[%s1654_s19 + $0x70] sm:$0xff]  ;;  %s1450_s20 = scalar_lea.vmem %s1779_s13, 384 }
  0x31   : > { %1253 = vmatpush3.msk.msra.mxu0 %vm642_vm1, %v393_v1  ;;  %1231 = vmatprep.mubr.msk.f32.mxu0 %vm395_vm2, %v379_v8  ;;  %v389_v28 = vmul.f32 %v376_v2, %v372_v26  ;;  %v390_v31 = vmul.f32 %v376_v2, %v373_v29  ;;  %v391_v32 = vmul.f32 %v376_v2, %v374_v30  ;;  %v375_v33 = vld [vmem:[%s1654_s19 + $0x78] sm:$0xff]  ;;  %v344_v35 = vld [vmem:[%s1691_s22] sm:$0xff]  ;;  %v345_v36 = vld [vmem:[%s1691_s22 + $0x8] sm:$0xff]  ;;  %s1777_s19 = scalar_lea.hbm %s1831_s8, %s1170_s10  ;;  %p1451_p9 = scmp.ne.s32.totalorder %s1779_s13, %s1450_s20 }
  0x32   : > { %v392_v34 = vmul.f32 %v376_v2, %v375_v33  ;;  %v346_v37 = vld [vmem:[%s1691_s22 + $0x10] sm:$0xff]  ;;  %v347_v38 = vld [vmem:[%s1691_s22 + $0x18] sm:$0xff]  ;;  %v348_v39 = vld [vmem:[%s1691_s22 + $0x20] sm:$0xff] }
  0x33   : > { %v349_v40 = vld [vmem:[%s1691_s22 + $0x28] sm:$0xff]  ;;  %v350_v41 = vld [vmem:[%s1691_s22 + $0x30] sm:$0xff]  ;;  %v351_v42 = vld [vmem:[%s1691_s22 + $0x38] sm:$0xff]  ;;  %p1452_p10 = pnand %p1451_p9, %p1610_p5 }
  0x34   : > { %1232 = vmatmul.mubr.msk.f32.gmra.mrb[2].mxu0 %vm395_vm2, %v380_v11  ;;  %v352_v43 = vld [vmem:[%s1691_s22 + $0x40] sm:$0xff]  ;;  %v353_v44 = vld [vmem:[%s1691_s22 + $0x48] sm:$0xff]  ;;  %v354_v45 = vld [vmem:[%s1691_s22 + $0x50] sm:$0xff] }
  0x35   : > { %1234 = vmatprep.mubr.msk.f32.mxu0 %vm395_vm2, %v381_v12  ;;  %v355_v46 = vld [vmem:[%s1691_s22 + $0x58] sm:$0xff]  ;;  %v356_v47 = vld [vmem:[%s1691_s22 + $0x60] sm:$0xff]  ;;  %v357_v48 = vld [vmem:[%s1691_s22 + $0x68] sm:$0xff]  ;;  %p1453_p12 = pneg %p1452_p10 }
  0x36   : > { %v358_v49 = vld [vmem:[%s1691_s22 + $0x70] sm:$0xff]  ;;  %v359_v50 = vld [vmem:[%s1691_s22 + $0x78] sm:$0xff]  ;;  %s1454_s22 = sshll.u32 %s1523_s21, 4  ;;  %s1455_s22 = int_to_ptr.vmem [resolvable:$false] %s1454_s22 }
  0x37   : > { %s1456_s23 = scalar_lea.vmem %s1455_s22, 768  ;;  %p1457_p13 = scmp.lt.s32.totalorder %s1779_s13, %s1455_s22 }
  0x38   : > { %1235 = vmatmul.mubr.msk.f32.gmra.mrb[4].mxu0 %vm395_vm2, %v382_v15  ;;  %p1458_p0 = scmp.lt.s32.totalorder %s1456_s23, %s1450_s20 }
  0x39   : > { %1237 = vmatprep.mubr.msk.f32.mxu0 %vm395_vm2, %v383_v16 }
  0x3a   : > { %p1459_p1 = por %p1458_p0, %p1457_p13 }
  0x3c   : > { %1238 = vmatmul.mubr.msk.f32.gmra.mrb[6].mxu0 %vm395_vm2, %v384_v19  ;;  %p1460_p2 = pnand %p1459_p1, %p1453_p12 }
  0x3d   : > { %1240 = vmatprep.mubr.msk.f32.mxu0 %vm395_vm2, %v385_v20 }
  0x40   : > { %1241 = vmatmul.mubr.msk.f32.gmra.mrb[8].mxu0 %vm395_vm2, %v386_v23 }
  0x41   : > { %1243 = vmatprep.mubr.msk.f32.mxu0 %vm395_vm2, %v387_v24 }
  0x44   : > { %1244 = vmatmul.mubr.msk.f32.gmra.mrb[10].mxu0 %vm395_vm2, %v388_v27 }
  0x45   : > { %1246 = vmatprep.mubr.msk.f32.mxu0 %vm395_vm2, %v389_v28 }
  0x48   : > { %1247 = vmatmul.mubr.msk.f32.gmra.mrb[12].mxu0 %vm395_vm2, %v390_v31 }
  0x49   : > { %1249 = vmatprep.mubr.msk.f32.mxu0 %vm395_vm2, %v391_v32 }
  0x4c   : > { %1250 = vmatmul.mubr.msk.f32.gmra.mrb[14].mxu0 %vm395_vm2, %v392_v34 }
  0x4d   : > { %1254 = vmatprep.mubr.msk.f32.mxu0 %vm593_vm3, %v344_v35 }
  0x50   : > { %1255 = vmatmul.mubr.msk.f32.vlgmr.msra.gmra.mrb[0].mxu0 %vm593_vm3, %v345_v36 }
  0x51   : > { %1257 = vmatprep.mubr.msk.f32.mxu0 %vm593_vm3, %v346_v37 }
  0x54   : > { %1258 = vmatmul.mubr.msk.f32.gmra.mrb[2].mxu0 %vm593_vm3, %v347_v38 }
  0x55   : > { %1260 = vmatprep.mubr.msk.f32.mxu0 %vm593_vm3, %v348_v39 }
  0x58   : > { %1261 = vmatmul.mubr.msk.f32.gmra.mrb[4].mxu0 %vm593_vm3, %v349_v40 }
  0x59   : > { %1263 = vmatprep.mubr.msk.f32.mxu0 %vm593_vm3, %v350_v41 }
  0x5c   : > { %1264 = vmatmul.mubr.msk.f32.gmra.mrb[6].mxu0 %vm593_vm3, %v351_v42 }
  0x5d   : > { %1266 = vmatprep.mubr.msk.f32.mxu0 %vm593_vm3, %v352_v43 }
  0x60   : > { %1267 = vmatmul.mubr.msk.f32.gmra.mrb[8].mxu0 %vm593_vm3, %v353_v44 }
  0x61   : > { %1269 = vmatprep.mubr.msk.f32.mxu0 %vm593_vm3, %v354_v45 }
  0x64   : > { %1270 = vmatmul.mubr.msk.f32.gmra.mrb[10].mxu0 %vm593_vm3, %v355_v46 }
  0x65   : > { %1272 = vmatprep.mubr.msk.f32.mxu0 %vm593_vm3, %v356_v47 }
  0x68   : > { %1273 = vmatmul.mubr.msk.f32.gmra.mrb[12].mxu0 %vm593_vm3, %v357_v48 }
  0x69   : > { %1275 = vmatprep.mubr.msk.f32.mxu0 %vm593_vm3, %v358_v49 }
  0x6c   : > { %1276 = vmatmul.mubr.msk.f32.gmra.mrb[14].mxu0 %vm593_vm3, %v359_v50  ;;  %v830_v50 = vld [vmem:[%s1829_s6] sm:$0xff] }
  0xaa   : > { %v839_v54 = vpop.permute.xlu0 %838 }
 0x123   : > { %v1256_v58 = vpop.f32.mrb[0].mxu0 }
 0x124   : > { %v799_v59 = vadd.f32 %v1256_v58, %v1169_v57  ;;  %v712_v60 = vpop.f32.mrb[1].mxu0 }
 0x125   : > { %v798_v61 = vadd.f32 %v1169_v57, %v712_v60 }
 0x126   : > { %v815_v62 = vmax.f32 %v799_v59, 0.0  ;;  %v844_v59 = vpop.permute.xlu0 %843 }
 0x127   : > { %v814_v63 = vmax.f32 %v798_v61, 0.0  ;;  %v1259_v0 = vpop.f32.mrb[2].mxu0 }
 0x128   : > { %v801_v1 = vadd.f32 %v1259_v0, %v1169_v57  ;;  %v722_v2 = vpop.f32.mrb[3].mxu0 }
 0x129   : > { %v800_v3 = vadd.f32 %v1169_v57, %v722_v2  ;;  %v1320_v4 = vpack.c.bf16 %v815_v62, %v814_v63 }
 0x12a   : > { %v817_v5 = vmax.f32 %v801_v1, 0.0 }
 0x12b   : > { %v816_v6 = vmax.f32 %v800_v3, 0.0  ;;  %v1262_v7 = vpop.f32.mrb[4].mxu0  ;;  %1321 = vmatpush3.bf16.xpose.msra.mxu1 %v1320_v4 }
 0x12c   : > { %v803_v8 = vadd.f32 %v1262_v7, %v1169_v57  ;;  %v732_v9 = vpop.f32.mrb[5].mxu0  ;;  %1322 = vmatprep.subr.bf16.mxu1 %v1519_v51 }
 0x12d   : > { %v1323_v10 = vpack.c.bf16 %v817_v5, %v816_v6  ;;  %v802_v11 = vadd.f32 %v1169_v57, %v732_v9 }
 0x12e   : > { %v819_v12 = vmax.f32 %v803_v8, 0.0 }
 0x12f   : > { %v818_v13 = vmax.f32 %v802_v11, 0.0  ;;  %v1265_v14 = vpop.f32.mrb[6].mxu0 }
 0x130   : > { %v805_v15 = vadd.f32 %v1265_v14, %v1169_v57  ;;  %v742_v16 = vpop.f32.mrb[7].mxu0 }
 0x131   : > { %v1326_v17 = vpack.c.bf16 %v819_v12, %v818_v13  ;;  %v804_v18 = vadd.f32 %v1169_v57, %v742_v16 }
 0x132   : > { %v821_v19 = vmax.f32 %v805_v15, 0.0 }
 0x133   : > { %v820_v20 = vmax.f32 %v804_v18, 0.0  ;;  %v1268_v21 = vpop.f32.mrb[8].mxu0  ;;  %1324 = vmatpush3.bf16.xpose.msra.mxu1 %v1323_v10 }
 0x134   : > { %v807_v22 = vadd.f32 %v1268_v21, %v1169_v57  ;;  %v752_v23 = vpop.f32.mrb[9].mxu0  ;;  %1325 = vmatprep.subr.bf16.mxu1 %v1519_v51 }
 0x135   : > { %v1329_v24 = vpack.c.bf16 %v821_v19, %v820_v20  ;;  %v806_v25 = vadd.f32 %v1169_v57, %v752_v23 }
 0x136   : > { %v823_v26 = vmax.f32 %v807_v22, 0.0 }
 0x137   : > { %v822_v27 = vmax.f32 %v806_v25, 0.0  ;;  %v1271_v28 = vpop.f32.mrb[10].mxu0 }
 0x138   : > { %v809_v29 = vadd.f32 %v1271_v28, %v1169_v57  ;;  %v762_v30 = vpop.f32.mrb[11].mxu0 }
 0x139   : > { %v1332_v31 = vpack.c.bf16 %v823_v26, %v822_v27  ;;  %v808_v32 = vadd.f32 %v1169_v57, %v762_v30 }
 0x13a   : > { %v825_v33 = vmax.f32 %v809_v29, 0.0 }
 0x13b   : > { %v824_v34 = vmax.f32 %v808_v32, 0.0  ;;  %v1274_v35 = vpop.f32.mrb[12].mxu0  ;;  %1327 = vmatpush3.bf16.xpose.msra.mxu1 %v1326_v17 }
 0x13c   : > { %v811_v36 = vadd.f32 %v1274_v35, %v1169_v57  ;;  %v772_v37 = vpop.f32.mrb[13].mxu0  ;;  %1328 = vmatprep.subr.bf16.mxu1 %v1519_v51 }
 0x13d   : > { %v1335_v38 = vpack.c.bf16 %v825_v33, %v824_v34  ;;  %v810_v39 = vadd.f32 %v1169_v57, %v772_v37 }
 0x13e   : > { %v827_v40 = vmax.f32 %v811_v36, 0.0 }
 0x13f   : > { %v826_v41 = vmax.f32 %v810_v39, 0.0  ;;  %v1277_v42 = vpop.f32.mrb[14].mxu0 }
 0x140   : > { %v813_v43 = vadd.f32 %v1277_v42, %v1169_v57  ;;  %v782_v44 = vpop.f32.mrb[15].mxu0 }
 0x141   : > { %v1338_v45 = vpack.c.bf16 %v827_v40, %v826_v41  ;;  %v812_v46 = vadd.f32 %v1169_v57, %v782_v44 }
 0x142   : > { %v829_v47 = vmax.f32 %v813_v43, 0.0 }
 0x143   : > { %v828_v48 = vmax.f32 %v812_v46, 0.0  ;;  %1330 = vmatpush3.bf16.xpose.msra.mxu1 %v1329_v24 }
 0x144   : > { %1331 = vmatprep.subr.bf16.mxu1 %v1519_v51 }
 0x145   : > { %v1341_v49 = vpack.c.bf16 %v829_v47, %v828_v48 }
 0x14b   : > { %1333 = vmatpush3.bf16.xpose.msra.mxu1 %v1332_v31 }
 0x14c   : > { %1334 = vmatprep.subr.bf16.mxu1 %v1519_v51 }
 0x153   : > { %1336 = vmatpush3.bf16.xpose.msra.mxu1 %v1335_v38 }
 0x154   : > { %1337 = vmatprep.subr.bf16.mxu1 %v1519_v51 }
 0x15b   : > { %1339 = vmatpush3.bf16.xpose.msra.mxu1 %v1338_v45 }
 0x15c   : > { %1340 = vmatprep.subr.bf16.mxu1 %v1519_v51  ;;  %v832_v51 = vld [vmem:[%s1829_s6 + $0x10] sm:$0x3] }
 0x163   : > { %1342 = vmatpush3.bf16.xpose.msra.mxu1 %v1341_v49 }
 0x16a   : > { %1311 = vmatmul.mubr.f32.vlgmr.msra.gmra.mrb[0].mxu1 %v830_v50 }
 0x16b   : > { %1313 = vmatprep.mubr.msk.f32.mxu1 %vm1520_vm4, %v1521_v52 }
 0x16e   : > { %1314 = vmatmul.mubr.f32.gmra.mrb[2].mxu1 %v831_v53 }
 0x16f   : > { %1316 = vmatprep.mubr.msk.f32.mxu1 %vm1520_vm4, %v1521_v52  ;;  %v849_v52 = vpop.permute.xlu1 %848 }
 0x172   : > { %1317 = vmatmul.mubr.f32.gmra.mrb[4].mxu1 %v832_v51 }
 0x23d   : > { %v917_v55 = vpop.f32.mrb[0].mxu1 }
 0x23e   : > { %v918_v57 = vadd.f32 %v917_v55, %v839_v54  ;;  %v1312_v58 = vpop.f32.mrb[1].mxu1 }
 0x240   : > { %v932_v60 = vmul.f32 %v931_v56, %v918_v57 }
 0x241   : > { %v922_v61 = vpop.f32.mrb[2].mxu1 }
 0x242   : > { %v935_v62 = vsel %vm642_vm1, %v932_v60, -inf  ;;  %v923_v63 = vadd.f32 %v922_v61, %v844_v59  ;;  %v1315_v0 = vpop.f32.mrb[3].mxu1  ;;  %v955_v5 = vsel %vm954_vm5, %v932_v60, -inf }
 0x243   : > { %v936_v1 = vrot.slane %v935_v62, 4 }
 0x244   : > { %v933_v2 = vmul.f32 %v931_v56, %v923_v63 }
 0x245   : > { %v937_v3 = vmax.f32 %v935_v62, %v936_v1  ;;  %v927_v4 = vpop.f32.mrb[4].mxu1 }
 0x246   : > { %v957_v6 = vsel %vm956_vm6, %v933_v2, -inf  ;;  %v928_v7 = vadd.f32 %v927_v4, %v849_v52  ;;  %v1318_v8 = vpop.f32.mrb[5].mxu1  ;;  %v989_v14 = vsel %vm988_vm8, %v933_v2, -inf }
 0x247   : > { %v938_v9 = vrot.slane %v937_v3, 2  ;;  %v958_v10 = vmax.f32 %v955_v5, %v957_v6 }
 0x248   : > { %v934_v11 = vmul.f32 %v931_v56, %v928_v7 }
 0x249   : > { %v939_v12 = vmax.f32 %v937_v3, %v938_v9  ;;  %v959_v13 = vrot.slane %v958_v10, 4 }
 0x24a   : > { %v990_v15 = vsel %vm973_vm7, %v934_v11, -inf }
 0x24b   : > { %v940_v16 = vrot.slane %v939_v12, 1  ;;  %v960_v17 = vmax.f32 %v958_v10, %v959_v13  ;;  %v991_v18 = vmax.f32 %v989_v14, %v990_v15 }
 0x24d   : > { %v941_v19 = vmax.f32 %v939_v12, %v940_v16  ;;  %v961_v20 = vrot.slane %v960_v17, 2  ;;  %v992_v21 = vrot.slane %v991_v18, 4 }
 0x24f   : > { %v942_v22 = vsub.f32 %v932_v60, %v941_v19  ;;  %v962_v23 = vmax.f32 %v960_v17, %v961_v20  ;;  %v993_v24 = vmax.f32 %v991_v18, %v992_v21 }
 0x251   : > { %v943_v25 = vmul.f32 1.442695, %v942_v22  ;;  %v963_v26 = vrot.slane %v962_v23, 1  ;;  %v994_v27 = vrot.slane %v993_v24, 2 }
 0x253   : > { %1419 = vpow2.f32 %v943_v25  ;;  %v964_v28 = vmax.f32 %v962_v23, %v963_v26  ;;  %v995_v29 = vmax.f32 %v993_v24, %v994_v27 }
 0x255   : > { %v965_v30 = vsub.f32 %v932_v60, %v964_v28  ;;  %v966_v31 = vsub.f32 %v933_v2, %v964_v28  ;;  %v996_v32 = vrot.slane %v995_v29, 1 }
 0x257   : > { %v967_v33 = vmul.f32 1.442695, %v965_v30  ;;  %v969_v34 = vmul.f32 1.442695, %v966_v31  ;;  %v997_v35 = vmax.f32 %v995_v29, %v996_v32 }
 0x259   : > { %1421 = vpow2.f32 %v967_v33  ;;  %v998_v36 = vsub.f32 %v933_v2, %v997_v35  ;;  %v999_v37 = vsub.f32 %v934_v11, %v997_v35 }
 0x25a   : > { %1423 = vpow2.f32 %v969_v34 }
 0x25b   : > { %v1000_v38 = vmul.f32 1.442695, %v998_v36  ;;  %v1002_v39 = vmul.f32 1.442695, %v999_v37 }
 0x25d   : > { %v1420_v40 = vpop.eup %1419  ;;  %1425 = vpow2.f32 %v1000_v38 }
 0x25e   : > { %v945_v41 = vsel %vm642_vm1, %v1420_v40, 0.0  ;;  %1427 = vpow2.f32 %v1002_v39 }
 0x25f   : > { %v946_v42 = vrot.slane %v945_v41, 4 }
 0x261   : > { %v947_v43 = vadd.f32 %v946_v42, %v945_v41 }
 0x263   : > { %v1422_v44 = vpop.eup %1421  ;;  %v948_v45 = vrot.slane %v947_v43, 2 }
 0x264   : > { %v1424_v46 = vpop.eup %1423  ;;  %v974_v47 = vrot.slane %v1422_v44, 6 }
 0x265   : > { %v975_v48 = vrot.slane %v1424_v46, 6  ;;  %v949_v50 = vadd.f32 %v948_v45, %v947_v43 }
 0x267   : > { %v1426_v49 = vpop.eup %1425  ;;  %v976_v53 = vsel %vm973_vm7, %v974_v47, %v975_v48  ;;  %v950_v58 = vrot.slane %v949_v50, 1 }
 0x268   : > { %v1428_v51 = vpop.eup %1427  ;;  %v978_v54 = vsel %vm642_vm1, %v976_v53, 0.0  ;;  %v1006_v55 = vrot.slane %v1426_v49, 4 }
 0x269   : > { %v979_v56 = vrot.slane %v978_v54, 4  ;;  %v1007_v57 = vrot.slane %v1428_v51, 4  ;;  %v951_v0 = vadd.f32 %v950_v58, %v949_v50 }
 0x26b   : > { %v980_v59 = vadd.f32 %v979_v56, %v978_v54  ;;  %v1008_v60 = vsel %vm956_vm6, %v1006_v55, %v1007_v57  ;;  %1429 = vrcp.f32 %v951_v0 }
 0x26c   : > { %v1010_v61 = vsel %vm642_vm1, %v1008_v60, 0.0 }
 0x26d   : > { %v981_v62 = vrot.slane %v980_v59, 2  ;;  %v1011_v63 = vrot.slane %v1010_v61, 4 }
 0x26f   : > { %v982_v1 = vadd.f32 %v981_v62, %v980_v59  ;;  %v1012_v52 = vadd.f32 %v1011_v63, %v1010_v61 }
 0x271   : > { %v983_v2 = vrot.slane %v982_v1, 1  ;;  %v1013_v3 = vrot.slane %v1012_v52, 2 }
 0x273   : > { %v984_v4 = vadd.f32 %v983_v2, %v982_v1  ;;  %v1014_v5 = vadd.f32 %v1013_v3, %v1012_v52 }
 0x275   : > { %1431 = vrcp.f32 %v984_v4  ;;  %v1015_v6 = vrot.slane %v1014_v5, 1  ;;  %v1430_v8 = vpop.eup %1429 }
 0x276   : > { %v953_v10 = vmul.f32 %v1430_v8, %v1420_v40 }
 0x277   : > { %v1016_v7 = vadd.f32 %v1015_v6, %v1014_v5 }
 0x279   : > { %1433 = vrcp.f32 %v1016_v7 }
 0x27f   : > { %v1432_v9 = vpop.eup %1431 }
 0x280   : > { %v986_v11 = vmul.f32 %v1432_v9, %v1422_v44  ;;  %v987_v12 = vmul.f32 %v1432_v9, %v1424_v46 }
 0x282   : > { %v1020_v13 = vsel %vm642_vm1, %v953_v10, %v986_v11 }
 0x283   : > { %v1434_v14 = vpop.eup %1433  ;;  %1022 = vst [vmem:[%s329_s12] sm:$0xff] %v1020_v13 }
 0x284   : > { %v1018_v15 = vmul.f32 %v1434_v14, %v1426_v49  ;;  %v1019_v16 = vmul.f32 %v1434_v14, %v1428_v51 }
 0x286   : > { %1024 = vst [vmem:[%s329_s12 + $0x10] sm:$0x3] %v1019_v16  ;;  %v1021_v17 = vsel %vm956_vm6, %v987_v12, %v1018_v15 }
 0x287   : > { %1023 = vst [vmem:[%s329_s12 + $0x8] sm:$0xff] %v1021_v17 }
 0x288   : > { %1463 = shalt.err (!%p1460_p2)
}
 0x289   : > { %s1464_s24 = scalar_lea.hbm %s1777_s19, 384  ;;  %s1468_s10 = scalar_lea.hbm %s1831_s8, 768 }
 0x28a   : > { %p1465_p3 = scmp.ne.s32.totalorder %s1777_s19, %s1464_s24  ;;  %p1469_p8 = scmp.lt.u32.totalorder %s1777_s19, %s1831_s8 }
 0x28b   : > { %p1470_p11 = scmp.lt.u32.totalorder %s1468_s10, %s1464_s24  ;;  %p1472_p10 = scmp.lt.u32.totalorder %s1464_s24, %s1777_s19 }
 0x28c   : > { %p1466_p4 = pnand %p1465_p3, %p1610_p5 }
 0x28d   : > { %p1471_p9 = por %p1470_p11, %p1469_p8 }
 0x28e   : > { %p1467_p7 = pneg %p1466_p4 }
 0x28f   : > { %p1473_p12 = por %p1472_p10, %p1471_p9 }
 0x291   : > { %p1474_p13 = pnand %p1473_p12, %p1467_p7 }
 0x293   : > { %1477 = shalt.err (!%p1474_p13)
}
 0x294   : > { %s1524_s18 = smov 128   ;;  %s1525_s20 = smov 256  }
 0x295   : > { %s1526_s21 = smov 8  }
 0x296   : > { %1364 = dma.vmem_to_hbm [thread:$0]  (%p1610_p5), %s1779_s13, 384, %s1777_s19, %s1782_s9, %s1524_s18, %s1525_s20, %s1526_s21  }
 0x297 PF: > { %p1376_p0 = scmp.ge.s32.totalorder %s1516_s30, 2  ;;  %s1053_s22 = sand.u32 1, %s1504_s27  }
 0x298   : > { %s1054_s23 = scalar_lea.sflag [#allocation3], %s1053_s22 }
 0x299   : > { %p1371_p1 = pnand %p1376_p0, %p1614_p6 }
 0x29b   : > { %1499 = dma.done.wait (!%p1371_p1), %s1054_s23, 384  }
 0x29c   : > { %1501 = vsyncadd (!%p1371_p1), %s1054_s23, 4294966912  ;;  %p19_p2 = scmp.ge.s32.totalorder %s1597_s11, 4   ;;  %s1835_s27 = smov %s1508_s28 }
 0x29d   : > { %s1836_s28 = smov %s1512_s29  ;;  %s1837_s29 = smov %s1608_s14 }
 0x29e   : > { %s1838_s30 = smov %s1597_s11  ;;  %21 = sbr.rel (!%p19_p2) target bundleno = 4 (0x4), region = 95 }
 0x2a5   :  { %1059 = vsyncpa [#allocation3], 1 }
 0x2a6   :  { %1061 = vsyncpa [#allocation3 + $0x1], 1 }
 0x2a7   :  { %1062 = vsyncpa [#allocation4], 1 }
 0x2a8   :  { %1064 = vsyncpa [#allocation4 + $0x1], 1 }

</bundles_post_ra>
